<compile_context>
chip_gen: v6e
topology: v6e:2x2x1
jax: 0.10.0
libtpu: 0.0.40
codegen_flags: <defaults>
</compile_context>

<pallas_src>
import jax
import jax.numpy as jnp
from jax.experimental import pallas as pl
from jax.experimental.pallas import tpu as pltpu


def _spectral_block_kernel(xr_ref, xi_ref, wr_ref, wi_ref, or_ref, oi_ref):
    """One (mode-tile, batch-tile) block of the complex spectral contraction.

    xr/xi : (TM, TB, C_in)    rfft(x) real / imag
    wr/wi : (TM, C_in, C_out) spectral weights real / imag
    or/oi : (TM, TB, C_out)   output spectrum real / imag
    """
    xr = xr_ref[...]
    xi = xi_ref[...]
    wr = wr_ref[...]
    wi = wi_ref[...]

    # Gauss 3-multiply complex product:
    #   p1 = xr@wr, p2 = xi@wi, p3 = (xr+xi)@(wr+wi)
    #   real = p1 - p2 ;  imag = p3 - p1 - p2
    # Operand sums are formed once per block (hoisted, no per-channel loop or
    # per-channel broadcasts); the batched einsum contracts over C_in with the
    # mode axis as the dot batch dimension.
    p1 = jnp.einsum("mbi,mio->mbo", xr, wr, preferred_element_type=jnp.float32)
    p2 = jnp.einsum("mbi,mio->mbo", xi, wi, preferred_element_type=jnp.float32)
    p3 = jnp.einsum("mbi,mio->mbo", xr + xi, wr + wi,
                    preferred_element_type=jnp.float32)

    # Single store per output block -- no accumulator round-trips through VMEM.
    or_ref[...] = p1 - p2
    oi_ref[...] = p3 - p1 - p2


def _round_up(n, m):
    return ((n + m - 1) // m) * m


def _pick_tiles(modes1, batch, c_in, c_out):
    """Choose (mode_tile, batch_tile) so a double-buffered tile set stays small."""
    # Batch tile: multiple of 8 (sublane) when possible, else the full batch
    # (a block dim equal to the full array dim is always legal).
    tb = 8 if (batch >= 8 and batch % 8 == 0) else batch
    # Mode tile: target ~4 MiB per buffer set (x2 pipeline buffers ~8 MiB),
    # which keeps double-buffering alive even under v7x's 64 MiB VMEM.
    per_mode_bytes = 4 * 2 * (tb * c_in + c_in * c_out + tb * c_out)
    tm = max(8, min(64, (4 * 1024 * 1024) // per_mode_bytes))
    tm = (tm // 8) * 8
    tm = min(tm, _round_up(modes1, 8))
    return tm, tb


def _compl_mul1d_pallas(xr, xi, wr, wi, tm, tb):
    """out[m,b,o] = sum_i x[m,b,i] * w[m,i,o]   (complex, split real/imag)."""
    m_pad, batch, c_in = xr.shape
    c_out = wr.shape[2]
    grid = (m_pad // tm, batch // tb)  # batch axis innermost (fastest-varying)

    x_spec = pl.BlockSpec((tm, tb, c_in), lambda m, b: (m, b, 0))
    # Weight block index is invariant in b -> DMA'd once per mode tile.
    w_spec = pl.BlockSpec((tm, c_in, c_out), lambda m, b: (m, 0, 0))
    o_spec = pl.BlockSpec((tm, tb, c_out), lambda m, b: (m, b, 0))

    out_sds = jax.ShapeDtypeStruct((m_pad, batch, c_out), jnp.float32)

    cost = pl.CostEstimate(
        flops=6 * m_pad * batch * c_in * c_out,          # 3 matmuls x 2 flops/MAC
        transcendentals=0,
        bytes_accessed=4 * (2 * m_pad * batch * c_in
                            + 2 * m_pad * c_in * c_out
                            + 2 * m_pad * batch * c_out),
    )

    return pl.pallas_call(
        _spectral_block_kernel,
        out_shape=(out_sds, out_sds),
        grid=grid,
        in_specs=[x_spec, x_spec, w_spec, w_spec],
        out_specs=(o_spec, o_spec),
        compiler_params=pltpu.CompilerParams(
            dimension_semantics=("parallel", "parallel"),
            vmem_limit_bytes=48 * 1024 * 1024,           # headroom under v7x's 64 MiB
        ),
        cost_estimate=cost,
    )(xr, xi, wr, wi)


def spectral_conv1d(x, w_real, w_imag, modes1):
    """Forward pass equivalent to PyTorch SpectralConv1d.forward.

    x       : (B, C_in, N) float32
    w_real  : (C_in, C_out, modes1) float32
    w_imag  : (C_in, C_out, modes1) float32
    returns : (B, C_out, N) float32
    """
    batch, c_in, n = x.shape
    c_out = w_real.shape[1]
    n_freq = n // 2 + 1
    assert modes1 <= n_freq

    # rfft along the last dim (glue; no Pallas FFT primitive), keep low modes.
    x_ft = jnp.fft.rfft(x.astype(jnp.float32), axis=-1)[:, :, :modes1]

    # Mode-major layout: modes on the leading (grid) axis (no 128-lane padding),
    # channels on the lane axis for the MXU contraction.
    xr = jnp.transpose(jnp.real(x_ft), (2, 0, 1)).astype(jnp.float32)   # (M, B, C_in)
    xi = jnp.transpose(jnp.imag(x_ft), (2, 0, 1)).astype(jnp.float32)
    wr = jnp.transpose(w_real.astype(jnp.float32), (2, 0, 1))           # (M, C_in, C_out)
    wi = jnp.transpose(w_imag.astype(jnp.float32), (2, 0, 1))

    tm, tb = _pick_tiles(modes1, batch, c_in, c_out)
    m_pad = _round_up(modes1, tm)
    if m_pad != modes1:
        pad = ((0, m_pad - modes1), (0, 0), (0, 0))
        xr, xi, wr, wi = [jnp.pad(a, pad) for a in (xr, xi, wr, wi)]

    out_r, out_i = _compl_mul1d_pallas(xr, xi, wr, wi, tm, tb)          # (m_pad, B, C_out)

    out_ft_m = (out_r[:modes1] + 1j * out_i[:modes1]).astype(jnp.complex64)
    out_ft_m = jnp.transpose(out_ft_m, (1, 2, 0))                       # (B, C_out, modes1)
    # High modes are zero: pad (no zeros + scatter round-trip).
    out_ft = jnp.pad(out_ft_m, ((0, 0), (0, 0), (0, n_freq - modes1)))

    # irfft back to physical space with length n (glue).
    return jnp.fft.irfft(out_ft, n=n, axis=-1).astype(jnp.float32)


def _reference(x, w_real, w_imag, modes1):
    """Pure-JAX reference mirroring the PyTorch module exactly."""
    batch, c_in, n = x.shape
    c_out = w_real.shape[1]
    w = (w_real + 1j * w_imag).astype(jnp.complex64)
    x_ft = jnp.fft.rfft(x, axis=-1)
    out_ft = jnp.zeros((batch, c_out, n // 2 + 1), jnp.complex64)
    out_ft = out_ft.at[:, :, :modes1].set(
        jnp.einsum("bix,iox->box", x_ft[:, :, :modes1], w,
                   precision=jax.lax.Precision.HIGHEST))
    return jnp.fft.irfft(out_ft, n=n, axis=-1).astype(jnp.float32)


def _run_case(key, batch, c_in, c_out, n, modes1):
    kx, kwr, kwi = jax.random.split(key, 3)
    x = jax.random.normal(kx, (batch, c_in, n), dtype=jnp.float32)
    # scale * U[0,1) for real and imag parts, matching
    # `scale * torch.rand(..., dtype=torch.cfloat)`.
    scale = 1.0 / (c_in * c_out)
    w_real = scale * jax.random.uniform(kwr, (c_in, c_out, modes1), dtype=jnp.float32)
    w_imag = scale * jax.random.uniform(kwi, (c_in, c_out, modes1), dtype=jnp.float32)

    out = jax.block_until_ready(spectral_conv1d(x, w_real, w_imag, modes1))
    ref = jax.block_until_ready(_reference(x, w_real, w_imag, modes1))

    assert out.shape == (batch, c_out, n)
    max_err = float(jnp.max(jnp.abs(out - ref)))
    ref_scale = float(jnp.max(jnp.abs(ref)))
    assert max_err <= 2e-3 * ref_scale + 1e-6, (max_err, ref_scale)


if __name__ == "__main__":
    key = jax.random.PRNGKey(0)
    k1, k2 = jax.random.split(key)

    # Small demo matching SpectralConv1d(in=4, out=4, modes1=5) on x = (2, 4, 16).
    _run_case(k1, batch=2, c_in=4, c_out=4, n=16, modes1=5)

    # Larger case exercising the multi-tile grid (4 mode tiles x 2 batch tiles),
    # weight-block DMA reuse across batch tiles, and mode-axis zero padding.
    _run_case(k2, batch=16, c_in=32, c_out=32, n=512, modes1=200)

    print("KERNEL_OK")
</pallas_src>

<mosaic_0001>
module attributes {stable_mosaic.version = 11 : i64} {
  func.func @_spectral_block_kernel(%arg0: i32, %arg1: i32, %arg2: memref<8x2x4xf32, #tpu.memory_space<vmem>>, %arg3: memref<8x2x4xf32, #tpu.memory_space<vmem>>, %arg4: memref<8x4x4xf32, #tpu.memory_space<vmem>>, %arg5: memref<8x4x4xf32, #tpu.memory_space<vmem>>, %arg6: memref<8x2x4xf32, #tpu.memory_space<vmem>>, %arg7: memref<8x2x4xf32, #tpu.memory_space<vmem>>) attributes {dimension_semantics = [#tpu.dimension_semantics<parallel>, #tpu.dimension_semantics<parallel>], iteration_bounds = array<i64: 1, 1>, scalar_prefetch = 0 : i64, scratch_operands = 0 : i64, tpu.core_type = #tpu.core_type<tc>, window_params = [{transform_indices = @transform_0, window_bounds = array<i64: 8, 2, 4>}, {transform_indices = @transform_1, window_bounds = array<i64: 8, 2, 4>}, {transform_indices = @transform_2, window_bounds = array<i64: 8, 4, 4>}, {transform_indices = @transform_3, window_bounds = array<i64: 8, 4, 4>}, {transform_indices = @transform_4, window_bounds = array<i64: 8, 2, 4>}, {transform_indices = @transform_5, window_bounds = array<i64: 8, 2, 4>}]} {
    %c0 = arith.constant 0 : index
    %c0_0 = arith.constant 0 : index
    %c0_1 = arith.constant 0 : index
    %0 = vector.load %arg2[%c0, %c0_0, %c0_1] : memref<8x2x4xf32, #tpu.memory_space<vmem>>, vector<8x2x4xf32>
    %c0_2 = arith.constant 0 : index
    %c0_3 = arith.constant 0 : index
    %c0_4 = arith.constant 0 : index
    %1 = vector.load %arg3[%c0_2, %c0_3, %c0_4] : memref<8x2x4xf32, #tpu.memory_space<vmem>>, vector<8x2x4xf32>
    %c0_5 = arith.constant 0 : index
    %c0_6 = arith.constant 0 : index
    %c0_7 = arith.constant 0 : index
    %2 = vector.load %arg4[%c0_5, %c0_6, %c0_7] : memref<8x4x4xf32, #tpu.memory_space<vmem>>, vector<8x4x4xf32>
    %c0_8 = arith.constant 0 : index
    %c0_9 = arith.constant 0 : index
    %c0_10 = arith.constant 0 : index
    %3 = vector.load %arg5[%c0_8, %c0_9, %c0_10] : memref<8x4x4xf32, #tpu.memory_space<vmem>>, vector<8x4x4xf32>
    "tpu.trace_start"() <{level = 10 : i32, message = "mbi,mio->mbo"}> : () -> ()
    %cst = arith.constant dense<0.000000e+00> : vector<8x2x4xf32>
    %4 = tpu.matmul %0, %2, %cst {dimension_numbers = #tpu.dot_dimension_numbers<[2], [1], [1], [2], [0, 0, 0, 1, 1, 2], [0], [0]>} : vector<8x2x4xf32>, vector<8x4x4xf32>, vector<8x2x4xf32> -> vector<8x2x4xf32>
    %cst_11 = arith.constant dense<0.000000e+00> : vector<8x2x4xf32>
    %5 = tpu.matmul %1, %3, %cst_11 {dimension_numbers = #tpu.dot_dimension_numbers<[2], [1], [1], [2], [0, 0, 0, 1, 1, 2], [0], [0]>} : vector<8x2x4xf32>, vector<8x4x4xf32>, vector<8x2x4xf32> -> vector<8x2x4xf32>
    "tpu.trace_stop"() : () -> ()
    %6 = arith.addf %0, %1 : vector<8x2x4xf32>
    %7 = arith.addf %2, %3 : vector<8x4x4xf32>
    "tpu.trace_start"() <{level = 10 : i32, message = "mbi,mio->mbo"}> : () -> ()
    %cst_12 = arith.constant dense<0.000000e+00> : vector<8x2x4xf32>
    %8 = tpu.matmul %6, %7, %cst_12 {dimension_numbers = #tpu.dot_dimension_numbers<[2], [1], [1], [2], [0, 0, 0, 1, 1, 2], [0], [0]>} : vector<8x2x4xf32>, vector<8x4x4xf32>, vector<8x2x4xf32> -> vector<8x2x4xf32>
    "tpu.trace_stop"() : () -> ()
    %9 = arith.subf %4, %5 : vector<8x2x4xf32>
    %c0_13 = arith.constant 0 : index
    %c0_14 = arith.constant 0 : index
    %c0_15 = arith.constant 0 : index
    %10 = vector.load %arg6[%c0_13, %c0_14, %c0_15] : memref<8x2x4xf32, #tpu.memory_space<vmem>>, vector<8x2x4xf32>
    tpu.vector_store %arg6[%c0_13, %c0_14, %c0_15], %9 {strides = array<i32>} : memref<8x2x4xf32, #tpu.memory_space<vmem>>, vector<8x2x4xf32>,
    %11 = arith.subf %8, %4 : vector<8x2x4xf32>
    %12 = arith.subf %11, %5 : vector<8x2x4xf32>
    %c0_16 = arith.constant 0 : index
    %c0_17 = arith.constant 0 : index
    %c0_18 = arith.constant 0 : index
    %13 = vector.load %arg7[%c0_16, %c0_17, %c0_18] : memref<8x2x4xf32, #tpu.memory_space<vmem>>, vector<8x2x4xf32>
    tpu.vector_store %arg7[%c0_16, %c0_17, %c0_18], %12 {strides = array<i32>} : memref<8x2x4xf32, #tpu.memory_space<vmem>>, vector<8x2x4xf32>,
    return
  }
  func.func @transform_0(%arg0: i32, %arg1: i32) -> (i32, i32, i32) {
    %c0_i32 = arith.constant 0 : i32
    %c0_i32_0 = arith.constant 0 : i32
    return %arg0, %arg1, %c0_i32 : i32, i32, i32
  }
  func.func @transform_1(%arg0: i32, %arg1: i32) -> (i32, i32, i32) {
    %c0_i32 = arith.constant 0 : i32
    %c0_i32_0 = arith.constant 0 : i32
    return %arg0, %arg1, %c0_i32 : i32, i32, i32
  }
  func.func @transform_2(%arg0: i32, %arg1: i32) -> (i32, i32, i32) {
    %c0_i32 = arith.constant 0 : i32
    %c0_i32_0 = arith.constant 0 : i32
    %c0_i32_1 = arith.constant 0 : i32
    return %arg0, %c0_i32, %c0_i32_0 : i32, i32, i32
  }
  func.func @transform_3(%arg0: i32, %arg1: i32) -> (i32, i32, i32) {
    %c0_i32 = arith.constant 0 : i32
    %c0_i32_0 = arith.constant 0 : i32
    %c0_i32_1 = arith.constant 0 : i32
    return %arg0, %c0_i32, %c0_i32_0 : i32, i32, i32
  }
  func.func @transform_4(%arg0: i32, %arg1: i32) -> (i32, i32, i32) {
    %c0_i32 = arith.constant 0 : i32
    %c0_i32_0 = arith.constant 0 : i32
    return %arg0, %arg1, %c0_i32 : i32, i32, i32
  }
  func.func @transform_5(%arg0: i32, %arg1: i32) -> (i32, i32, i32) {
    %c0_i32 = arith.constant 0 : i32
    %c0_i32_0 = arith.constant 0 : i32
    return %arg0, %arg1, %c0_i32 : i32, i32, i32
  }
}

</mosaic_0001>

<bundles_post_ra>
// kernel: tpu_custom_call.1
= control target key start
LH: loop header
LB: loop body
LE: loop exit
PB: predicated region body
PF: predicated region fallthrough
CT: control target
= control target key end

     0   :  { %vm55_vm0 = vcmask 1043456   ;;  %v2160_v0 = vmov 0.0   ;;  %vm51_vm1 = vcmask 31744   ;;  %vm2161_vm2 = vmmov 0   ;;  %s2560_s2 = inlined_call_operand.vmem [shape: f32[8,4,4], index: 2, kind: input, shape index: {}]   ;;  %s2561_s0 = inlined_call_operand.vmem [shape: f32[8,2,4], index: 0, kind: input, shape index: {}]   ;;  %s2562_s3 = inlined_call_operand.vmem [shape: f32[8,4,4], index: 3, kind: input, shape index: {}]   ;;  %s2563_s1 = inlined_call_operand.vmem [shape: f32[8,2,4], index: 1, kind: input, shape index: {}]   ;;  %s2564_s4 = inlined_call_operand.vmem [shape: f32[8,2,4], index: 4, kind: output, shape index: {0}]   ;;  %s2565_s5 = inlined_call_operand.vmem [shape: f32[8,2,4], index: 5, kind: output, shape index: {1}]  }
   0x1   :  { %2038 = vmatprep.subr.mxu0 %v2160_v0  ;;  %2043 = vmatprep.subr.mxu1 %v2160_v0  ;;  %v2197_v1 = vld [vmem:[%s2560_s2] sm:$0xf]  ;;  %v2202_v2 = vld [vmem:[%s2560_s2 + $0x4] sm:$0xf]  ;;  %v2225_v5 = vld [vmem:[%s2560_s2 + $0x8] sm:$0xf] }
   0x2   :  { %2039 = vmatpush3.msk.msra.mxu0 %vm55_vm0, %v2197_v1  ;;  %2040 = vmatprep.mubr.msk.f32.mxu0 %vm2161_vm2, %v2160_v0  ;;  %v2211_v3 = vld [vmem:[%s2561_s0] sm:$0x3]  ;;  %v2220_v4 = vld [vmem:[%s2561_s0 + $0x2] sm:$0x3]  ;;  %v2234_v6 = vld [vmem:[%s2560_s2 + $0xc] sm:$0xf] }
   0x3   :  { %2044 = vmatpush3.msk.msra.mxu1 %vm55_vm0, %v2202_v2  ;;  %2045 = vmatprep.mubr.msk.f32.mxu1 %vm2161_vm2, %v2160_v0  ;;  %v2241_v7 = vld [vmem:[%s2561_s0 + $0x4] sm:$0x3]  ;;  %v2246_v8 = vld [vmem:[%s2561_s0 + $0x6] sm:$0x3]  ;;  %v2259_v9 = vld [vmem:[%s2560_s2 + $0x10] sm:$0xf] }
   0x4   :  { %2041 = vmatmul.mubr.msk.f32.vlgmr.msra.gmra.mxu0 %vm51_vm1, %v2211_v3  ;;  %2046 = vmatmul.mubr.msk.f32.vlgmr.msra.gmra.mxu1 %vm51_vm1, %v2220_v4  ;;  %v2264_v10 = vld [vmem:[%s2560_s2 + $0x14] sm:$0xf]  ;;  %v2275_v11 = vld [vmem:[%s2561_s0 + $0x8] sm:$0x3]  ;;  %v2280_v12 = vld [vmem:[%s2561_s0 + $0xa] sm:$0x3] }
   0x5   :  { %2048 = vmatprep.subr.mxu0 %v2160_v0  ;;  %2053 = vmatprep.subr.mxu1 %v2160_v0  ;;  %v2293_v13 = vld [vmem:[%s2560_s2 + $0x18] sm:$0xf]  ;;  %v2298_v14 = vld [vmem:[%s2560_s2 + $0x1c] sm:$0xf]  ;;  %v2309_v15 = vld [vmem:[%s2561_s0 + $0xc] sm:$0x3] }
   0x6   :  { %2049 = vmatpush3.msk.msra.mxu0 %vm55_vm0, %v2225_v5  ;;  %2054 = vmatpush3.msk.msra.mxu1 %vm55_vm0, %v2234_v6  ;;  %v2314_v16 = vld [vmem:[%s2561_s0 + $0xe] sm:$0x3]  ;;  %v43_v17 = vld [vmem:[%s2562_s3] sm:$0xf]  ;;  %v44_v18 = vld [vmem:[%s2562_s3 + $0x4] sm:$0xf] }
   0x7   :  { %2050 = vmatprep.mubr.msk.f32.mxu0 %vm2161_vm2, %v2160_v0  ;;  %2055 = vmatprep.mubr.msk.f32.mxu1 %vm2161_vm2, %v2160_v0  ;;  %v27_v19 = vld [vmem:[%s2563_s1] sm:$0x3]  ;;  %v28_v20 = vld [vmem:[%s2563_s1 + $0x2] sm:$0x3]  ;;  %v45_v21 = vld [vmem:[%s2562_s3 + $0x8] sm:$0xf]  ;;  %v1277_v33 = vadd.f32 %v43_v17, %v2197_v1  ;;  %v1278_v34 = vadd.f32 %v44_v18, %v2202_v2 }
   0x8   :  { %2051 = vmatmul.mubr.msk.f32.vlgmr.msra.gmra.mxu0 %vm51_vm1, %v2241_v7  ;;  %2056 = vmatmul.mubr.msk.f32.vlgmr.msra.gmra.mxu1 %vm51_vm1, %v2246_v8  ;;  %v46_v22 = vld [vmem:[%s2562_s3 + $0xc] sm:$0xf]  ;;  %v29_v23 = vld [vmem:[%s2563_s1 + $0x4] sm:$0x3]  ;;  %v30_v24 = vld [vmem:[%s2563_s1 + $0x6] sm:$0x3]  ;;  %v1269_v35 = vadd.f32 %v27_v19, %v2211_v3  ;;  %v1270_v36 = vadd.f32 %v28_v20, %v2220_v4  ;;  %v1279_v37 = vadd.f32 %v45_v21, %v2225_v5 }
   0x9   :  { %2058 = vmatprep.subr.mxu0 %v2160_v0  ;;  %2063 = vmatprep.subr.mxu1 %v2160_v0  ;;  %v47_v25 = vld [vmem:[%s2562_s3 + $0x10] sm:$0xf]  ;;  %v48_v26 = vld [vmem:[%s2562_s3 + $0x14] sm:$0xf]  ;;  %v31_v27 = vld [vmem:[%s2563_s1 + $0x8] sm:$0x3]  ;;  %v1280_v38 = vadd.f32 %v46_v22, %v2234_v6  ;;  %v1271_v39 = vadd.f32 %v29_v23, %v2241_v7  ;;  %v1272_v40 = vadd.f32 %v30_v24, %v2246_v8 }
   0xa   :  { %2059 = vmatpush3.msk.msra.mxu0 %vm55_vm0, %v2259_v9  ;;  %2064 = vmatpush3.msk.msra.mxu1 %vm55_vm0, %v2264_v10  ;;  %v32_v28 = vld [vmem:[%s2563_s1 + $0xa] sm:$0x3]  ;;  %v49_v29 = vld [vmem:[%s2562_s3 + $0x18] sm:$0xf]  ;;  %v50_v30 = vld [vmem:[%s2562_s3 + $0x1c] sm:$0xf]  ;;  %v1281_v41 = vadd.f32 %v47_v25, %v2259_v9  ;;  %v1282_v42 = vadd.f32 %v48_v26, %v2264_v10  ;;  %v1273_v43 = vadd.f32 %v31_v27, %v2275_v11 }
   0xb   :  { %2060 = vmatprep.mubr.msk.f32.mxu0 %vm2161_vm2, %v2160_v0  ;;  %2065 = vmatprep.mubr.msk.f32.mxu1 %vm2161_vm2, %v2160_v0  ;;  %v33_v31 = vld [vmem:[%s2563_s1 + $0xc] sm:$0x3]  ;;  %v34_v32 = vld [vmem:[%s2563_s1 + $0xe] sm:$0x3]  ;;  %v1274_v44 = vadd.f32 %v32_v28, %v2280_v12  ;;  %v1283_v45 = vadd.f32 %v49_v29, %v2293_v13  ;;  %v1284_v46 = vadd.f32 %v50_v30, %v2298_v14  ;;  %vm1901_vm3 = vcmask 25600  }
   0xc   :  { %2061 = vmatmul.mubr.msk.f32.vlgmr.msra.gmra.mxu0 %vm51_vm1, %v2275_v11  ;;  %2066 = vmatmul.mubr.msk.f32.vlgmr.msra.gmra.mxu1 %vm51_vm1, %v2280_v12  ;;  %v1275_v47 = vadd.f32 %v33_v31, %v2309_v15  ;;  %v1276_v48 = vadd.f32 %v34_v32, %v2314_v16 }
   0xd   :  { %2068 = vmatprep.subr.mxu0 %v2160_v0  ;;  %2073 = vmatprep.subr.mxu1 %v2160_v0 }
   0xe   :  { %2069 = vmatpush3.msk.msra.mxu0 %vm55_vm0, %v2293_v13  ;;  %2074 = vmatpush3.msk.msra.mxu1 %vm55_vm0, %v2298_v14 }
   0xf   :  { %2070 = vmatprep.mubr.msk.f32.mxu0 %vm2161_vm2, %v2160_v0  ;;  %2075 = vmatprep.mubr.msk.f32.mxu1 %vm2161_vm2, %v2160_v0 }
  0x10   :  { %2071 = vmatmul.mubr.msk.f32.vlgmr.msra.gmra.mxu0 %vm51_vm1, %v2309_v15  ;;  %2076 = vmatmul.mubr.msk.f32.vlgmr.msra.gmra.mxu1 %vm51_vm1, %v2314_v16 }
  0x11   :  { %2078 = vmatprep.subr.mxu0 %v2160_v0  ;;  %2083 = vmatprep.subr.mxu1 %v2160_v0 }
  0x12   :  { %2079 = vmatpush3.msk.msra.mxu0 %vm55_vm0, %v43_v17  ;;  %2084 = vmatpush3.msk.msra.mxu1 %vm55_vm0, %v44_v18 }
  0x13   :  { %2080 = vmatprep.mubr.msk.f32.mxu0 %vm2161_vm2, %v2160_v0  ;;  %2085 = vmatprep.mubr.msk.f32.mxu1 %vm2161_vm2, %v2160_v0 }
  0x14   :  { %2081 = vmatmul.mubr.msk.f32.vlgmr.msra.gmra.mxu0 %vm51_vm1, %v27_v19  ;;  %2086 = vmatmul.mubr.msk.f32.vlgmr.msra.gmra.mxu1 %vm51_vm1, %v28_v20 }
  0x15   :  { %2088 = vmatprep.subr.mxu0 %v2160_v0  ;;  %2093 = vmatprep.subr.mxu1 %v2160_v0 }
  0x16   :  { %2089 = vmatpush3.msk.msra.mxu0 %vm55_vm0, %v45_v21  ;;  %2094 = vmatpush3.msk.msra.mxu1 %vm55_vm0, %v46_v22 }
  0x17   :  { %2090 = vmatprep.mubr.msk.f32.mxu0 %vm2161_vm2, %v2160_v0  ;;  %2095 = vmatprep.mubr.msk.f32.mxu1 %vm2161_vm2, %v2160_v0 }
  0x18   :  { %2091 = vmatmul.mubr.msk.f32.vlgmr.msra.gmra.mxu0 %vm51_vm1, %v29_v23  ;;  %2096 = vmatmul.mubr.msk.f32.vlgmr.msra.gmra.mxu1 %vm51_vm1, %v30_v24 }
  0x19   :  { %2098 = vmatprep.subr.mxu0 %v2160_v0  ;;  %2103 = vmatprep.subr.mxu1 %v2160_v0 }
  0x1a   :  { %2099 = vmatpush3.msk.msra.mxu0 %vm55_vm0, %v47_v25  ;;  %2104 = vmatpush3.msk.msra.mxu1 %vm55_vm0, %v48_v26 }
  0x1b   :  { %2100 = vmatprep.mubr.msk.f32.mxu0 %vm2161_vm2, %v2160_v0  ;;  %2105 = vmatprep.mubr.msk.f32.mxu1 %vm2161_vm2, %v2160_v0 }
  0x1c   :  { %2101 = vmatmul.mubr.msk.f32.vlgmr.msra.gmra.mxu0 %vm51_vm1, %v31_v27  ;;  %2106 = vmatmul.mubr.msk.f32.vlgmr.msra.gmra.mxu1 %vm51_vm1, %v32_v28 }
  0x1d   :  { %2108 = vmatprep.subr.mxu0 %v2160_v0  ;;  %2113 = vmatprep.subr.mxu1 %v2160_v0 }
  0x1e   :  { %2109 = vmatpush3.msk.msra.mxu0 %vm55_vm0, %v49_v29  ;;  %2114 = vmatpush3.msk.msra.mxu1 %vm55_vm0, %v50_v30 }
  0x1f   :  { %2110 = vmatprep.mubr.msk.f32.mxu0 %vm2161_vm2, %v2160_v0  ;;  %2115 = vmatprep.mubr.msk.f32.mxu1 %vm2161_vm2, %v2160_v0 }
  0x20   :  { %2111 = vmatmul.mubr.msk.f32.vlgmr.msra.gmra.mxu0 %vm51_vm1, %v33_v31  ;;  %2116 = vmatmul.mubr.msk.f32.vlgmr.msra.gmra.mxu1 %vm51_vm1, %v34_v32 }
  0x21   :  { %2118 = vmatprep.subr.mxu0 %v2160_v0  ;;  %2123 = vmatprep.subr.mxu1 %v2160_v0 }
  0x22   :  { %2119 = vmatpush3.msk.msra.mxu0 %vm55_vm0, %v1277_v33  ;;  %2124 = vmatpush3.msk.msra.mxu1 %vm55_vm0, %v1278_v34 }
  0x23   :  { %2120 = vmatprep.mubr.msk.f32.mxu0 %vm2161_vm2, %v2160_v0  ;;  %2125 = vmatprep.mubr.msk.f32.mxu1 %vm2161_vm2, %v2160_v0 }
  0x24   :  { %2121 = vmatmul.mubr.msk.f32.vlgmr.msra.gmra.mxu0 %vm51_vm1, %v1269_v35  ;;  %2126 = vmatmul.mubr.msk.f32.vlgmr.msra.gmra.mxu1 %vm51_vm1, %v1270_v36 }
  0x25   :  { %2128 = vmatprep.subr.mxu0 %v2160_v0  ;;  %2133 = vmatprep.subr.mxu1 %v2160_v0 }
  0x26   :  { %2129 = vmatpush3.msk.msra.mxu0 %vm55_vm0, %v1279_v37  ;;  %2134 = vmatpush3.msk.msra.mxu1 %vm55_vm0, %v1280_v38 }
  0x27   :  { %2130 = vmatprep.mubr.msk.f32.mxu0 %vm2161_vm2, %v2160_v0  ;;  %2135 = vmatprep.mubr.msk.f32.mxu1 %vm2161_vm2, %v2160_v0 }
  0x28   :  { %2131 = vmatmul.mubr.msk.f32.vlgmr.msra.gmra.mxu0 %vm51_vm1, %v1271_v39  ;;  %2136 = vmatmul.mubr.msk.f32.vlgmr.msra.gmra.mxu1 %vm51_vm1, %v1272_v40 }
  0x29   :  { %2138 = vmatprep.subr.mxu0 %v2160_v0  ;;  %2143 = vmatprep.subr.mxu1 %v2160_v0 }
  0x2a   :  { %2139 = vmatpush3.msk.msra.mxu0 %vm55_vm0, %v1281_v41  ;;  %2144 = vmatpush3.msk.msra.mxu1 %vm55_vm0, %v1282_v42 }
  0x2b   :  { %2140 = vmatprep.mubr.msk.f32.mxu0 %vm2161_vm2, %v2160_v0  ;;  %2145 = vmatprep.mubr.msk.f32.mxu1 %vm2161_vm2, %v2160_v0 }
  0x2c   :  { %2141 = vmatmul.mubr.msk.f32.vlgmr.msra.gmra.mxu0 %vm51_vm1, %v1273_v43  ;;  %2146 = vmatmul.mubr.msk.f32.vlgmr.msra.gmra.mxu1 %vm51_vm1, %v1274_v44 }
  0x2d   :  { %2148 = vmatprep.subr.mxu0 %v2160_v0  ;;  %2153 = vmatprep.subr.mxu1 %v2160_v0 }
  0x2e   :  { %2149 = vmatpush3.msk.msra.mxu0 %vm55_vm0, %v1283_v45  ;;  %2154 = vmatpush3.msk.msra.mxu1 %vm55_vm0, %v1284_v46 }
  0x2f   :  { %2150 = vmatprep.mubr.msk.f32.mxu0 %vm2161_vm2, %v2160_v0  ;;  %2155 = vmatprep.mubr.msk.f32.mxu1 %vm2161_vm2, %v2160_v0 }
  0x30   :  { %2151 = vmatmul.mubr.msk.f32.vlgmr.msra.gmra.mxu0 %vm51_vm1, %v1275_v47  ;;  %2156 = vmatmul.mubr.msk.f32.vlgmr.msra.gmra.mxu1 %vm51_vm1, %v1276_v48 }
  0xc4   :  { %v125_v49 = vpop.f32.mrf.mxu0  ;;  %v201_v50 = vpop.f32.mrf.mxu1 }
  0xc6   :  { %v2042_v51 = vpop.f32.mrf.mxu0  ;;  %v2047_v52 = vpop.f32.mrf.mxu1 }
  0xc8   :  { %v2472_v53 = vpop.f32.mrf.mxu0  ;;  %v2474_v54 = vpop.f32.mrf.mxu1 }
  0xca   :  { %v2052_v55 = vpop.f32.mrf.mxu0  ;;  %v2057_v56 = vpop.f32.mrf.mxu1 }
  0xcc   :  { %v2476_v57 = vpop.f32.mrf.mxu0  ;;  %v2478_v58 = vpop.f32.mrf.mxu1 }
  0xce   :  { %v2062_v59 = vpop.f32.mrf.mxu0  ;;  %v2067_v60 = vpop.f32.mrf.mxu1 }
  0xd0   :  { %v2480_v61 = vpop.f32.mrf.mxu0  ;;  %v2482_v62 = vpop.f32.mrf.mxu1 }
  0xd2   :  { %v2072_v63 = vpop.f32.mrf.mxu0  ;;  %v2077_v0 = vpop.f32.mrf.mxu1 }
  0xd4   :  { %v733_v1 = vpop.f32.mrf.mxu0  ;;  %v809_v2 = vpop.f32.mrf.mxu1 }
  0xd5   :  { %v1893_v3 = vsub.f32 %v125_v49, %v733_v1  ;;  %v1894_v4 = vsub.f32 %v201_v50, %v809_v2 }
  0xd6   :  { %v2082_v5 = vpop.f32.mrf.mxu0  ;;  %v2087_v6 = vpop.f32.mrf.mxu1 }
  0xd7   :  { %1902 = vst.msk [vmem:[%s2564_s4] sm:$0x3] %vm1901_vm3, %v1893_v3  ;;  %1903 = vst.msk [vmem:[%s2564_s4 + $0x2] sm:$0x3] %vm1901_vm3, %v1894_v4 }
  0xd8   :  { %v885_v7 = vpop.f32.mrf.mxu0  ;;  %v961_v8 = vpop.f32.mrf.mxu1 }
  0xd9   :  { %v1895_v9 = vsub.f32 %v2472_v53, %v885_v7  ;;  %v1896_v10 = vsub.f32 %v2474_v54, %v961_v8 }
  0xda   :  { %v2092_v11 = vpop.f32.mrf.mxu0  ;;  %v2097_v12 = vpop.f32.mrf.mxu1 }
  0xdb   :  { %1904 = vst.msk [vmem:[%s2564_s4 + $0x4] sm:$0x3] %vm1901_vm3, %v1895_v9  ;;  %1905 = vst.msk [vmem:[%s2564_s4 + $0x6] sm:$0x3] %vm1901_vm3, %v1896_v10 }
  0xdc   :  { %v1037_v13 = vpop.f32.mrf.mxu0  ;;  %v1113_v14 = vpop.f32.mrf.mxu1 }
  0xdd   :  { %v1897_v15 = vsub.f32 %v2476_v57, %v1037_v13  ;;  %v1898_v16 = vsub.f32 %v2478_v58, %v1113_v14 }
  0xde   :  { %v2102_v17 = vpop.f32.mrf.mxu0  ;;  %v2107_v18 = vpop.f32.mrf.mxu1 }
  0xdf   :  { %1906 = vst.msk [vmem:[%s2564_s4 + $0x8] sm:$0x3] %vm1901_vm3, %v1897_v15  ;;  %1907 = vst.msk [vmem:[%s2564_s4 + $0xa] sm:$0x3] %vm1901_vm3, %v1898_v16 }
  0xe0   :  { %v1189_v19 = vpop.f32.mrf.mxu0  ;;  %v1265_v20 = vpop.f32.mrf.mxu1 }
  0xe1   :  { %v1899_v21 = vsub.f32 %v2480_v61, %v1189_v19  ;;  %v1900_v22 = vsub.f32 %v2482_v62, %v1265_v20 }
  0xe2   :  { %v2112_v23 = vpop.f32.mrf.mxu0  ;;  %v2117_v24 = vpop.f32.mrf.mxu1 }
  0xe3   :  { %1908 = vst.msk [vmem:[%s2564_s4 + $0xc] sm:$0x3] %vm1901_vm3, %v1899_v21  ;;  %1909 = vst.msk [vmem:[%s2564_s4 + $0xe] sm:$0x3] %vm1901_vm3, %v1900_v22 }
  0xe4   :  { %v1357_v25 = vpop.f32.mrf.mxu0  ;;  %v1433_v26 = vpop.f32.mrf.mxu1 }
  0xe5   :  { %v1910_v27 = vsub.f32 %v1357_v25, %v125_v49  ;;  %v1911_v28 = vsub.f32 %v1433_v26, %v201_v50 }
  0xe6   :  { %v2122_v29 = vpop.f32.mrf.mxu0  ;;  %v2127_v30 = vpop.f32.mrf.mxu1 }
  0xe7   :  { %v1918_v31 = vsub.f32 %v1910_v27, %v733_v1  ;;  %v1919_v32 = vsub.f32 %v1911_v28, %v809_v2 }
  0xe8   :  { %v1509_v33 = vpop.f32.mrf.mxu0  ;;  %v1585_v34 = vpop.f32.mrf.mxu1 }
  0xe9   :  { %1926 = vst.msk [vmem:[%s2565_s5] sm:$0x3] %vm1901_vm3, %v1918_v31  ;;  %1927 = vst.msk [vmem:[%s2565_s5 + $0x2] sm:$0x3] %vm1901_vm3, %v1919_v32  ;;  %v1912_v35 = vsub.f32 %v1509_v33, %v2472_v53  ;;  %v1913_v36 = vsub.f32 %v1585_v34, %v2474_v54 }
  0xea   :  { %v2132_v37 = vpop.f32.mrf.mxu0  ;;  %v2137_v38 = vpop.f32.mrf.mxu1 }
  0xeb   :  { %v1920_v39 = vsub.f32 %v1912_v35, %v885_v7  ;;  %v1921_v40 = vsub.f32 %v1913_v36, %v961_v8 }
  0xec   :  { %v1661_v41 = vpop.f32.mrf.mxu0  ;;  %v1737_v42 = vpop.f32.mrf.mxu1 }
  0xed   :  { %1928 = vst.msk [vmem:[%s2565_s5 + $0x4] sm:$0x3] %vm1901_vm3, %v1920_v39  ;;  %1929 = vst.msk [vmem:[%s2565_s5 + $0x6] sm:$0x3] %vm1901_vm3, %v1921_v40  ;;  %v1914_v43 = vsub.f32 %v1661_v41, %v2476_v57  ;;  %v1915_v44 = vsub.f32 %v1737_v42, %v2478_v58 }
  0xee   :  { %v2142_v45 = vpop.f32.mrf.mxu0  ;;  %v2147_v46 = vpop.f32.mrf.mxu1 }
  0xef   :  { %v1922_v47 = vsub.f32 %v1914_v43, %v1037_v13  ;;  %v1923_v48 = vsub.f32 %v1915_v44, %v1113_v14 }
  0xf0   :  { %v1813_v49 = vpop.f32.mrf.mxu0  ;;  %v1889_v50 = vpop.f32.mrf.mxu1 }
  0xf1   :  { %1930 = vst.msk [vmem:[%s2565_s5 + $0x8] sm:$0x3] %vm1901_vm3, %v1922_v47  ;;  %1931 = vst.msk [vmem:[%s2565_s5 + $0xa] sm:$0x3] %vm1901_vm3, %v1923_v48  ;;  %v1916_v51 = vsub.f32 %v1813_v49, %v2480_v61  ;;  %v1917_v52 = vsub.f32 %v1889_v50, %v2482_v62 }
  0xf2   :  { %v2152_v53 = vpop.f32.mrf.mxu0  ;;  %v2157_v54 = vpop.f32.mrf.mxu1 }
  0xf3   :  { %v1924_v55 = vsub.f32 %v1916_v51, %v1189_v19  ;;  %v1925_v56 = vsub.f32 %v1917_v52, %v1265_v20 }
  0xf5   :  { %1932 = vst.msk [vmem:[%s2565_s5 + $0xc] sm:$0x3] %vm1901_vm3, %v1924_v55  ;;  %1933 = vst.msk [vmem:[%s2565_s5 + $0xe] sm:$0x3] %vm1901_vm3, %v1925_v56 }

</bundles_post_ra>
